<compile_context>
chip_gen: v5e
topology: v5e:2x2
jax: 0.10.0
libtpu: 0.0.40
codegen_flags: <defaults>
</compile_context>

<pallas_src>
import math

import jax
import jax.numpy as jnp
from jax import lax
from jax.experimental import pallas as pl
from jax.experimental.pallas import tpu as pltpu

_E10 = math.exp(10.0)  # compile-time constant for the clamp-at-10 on softplus


def _actor_kernel(x_ref, w1_ref, b1_ref, w2_ref, b2_ref, wh_ref, bh_ref, out_ref):
    # x tile: [inp, TB] with batch on lanes.
    x = x_ref[...]

    # Layer 1: inp -> 64, ReLU
    h1 = jnp.dot(w1_ref[...], x, preferred_element_type=jnp.float32) + b1_ref[...]
    h1 = jnp.maximum(h1, 0.0)

    # Layer 2: 64 -> 32, ReLU
    h2 = jnp.dot(w2_ref[...], h1, preferred_element_type=jnp.float32) + b2_ref[...]
    h2 = jnp.maximum(h2, 0.0)

    # Fused heads: rows [0:outp] are the mean head, rows [outp:2*outp] the std head.
    hm = jnp.dot(wh_ref[...], h2, preferred_element_type=jnp.float32) + bh_ref[...]

    outp = out_ref.shape[0] // 2
    mean_all = 30.0 * jnp.tanh(hm)
    # exp(clamp(softplus(s), -2, 10)) == min(1 + exp(s), e^10)   (softplus >= 0)
    std_all = jnp.minimum(1.0 + jnp.exp(hm), _E10)

    row = lax.broadcasted_iota(jnp.int32, hm.shape, 0)
    out_ref[...] = jnp.where(row < outp, mean_all, std_all)


def actor_net_forward(x, params, tb=512):
    """x: [B, inp] float32. params: PyTorch-layout weights (see init_params).

    Returns (mean, std), each [B, outp] float32.
    """
    B, inp = x.shape
    outp = params["wm"].shape[0]

    # Lane-aligned batch tile; pad batch up to a multiple of the tile.
    lane = 128
    tb = max(lane, min(tb, pl.cdiv(B, lane) * lane))
    b_pad = pl.cdiv(B, tb) * tb

    x_pad = x if b_pad == B else jnp.pad(x, ((0, b_pad - B), (0, 0)))
    xt = x_pad.T.astype(jnp.float32)                      # [inp, B_pad], batch on lanes

    # Fuse the two heads: one [2*outp, 32] weight, one [2*outp, 1] bias.
    wh = jnp.concatenate([params["wm"], params["ws"]], axis=0)
    bh = jnp.concatenate([params["bm"], params["bs"]], axis=0)

    grid = (b_pad // tb,)

    fused = pl.pallas_call(
        _actor_kernel,
        out_shape=jax.ShapeDtypeStruct((2 * outp, b_pad), jnp.float32),
        grid=grid,
        in_specs=[
            pl.BlockSpec((inp, tb), lambda i: (0, i)),        # x tile (pipelined)
            pl.BlockSpec((64, inp), lambda i: (0, 0)),        # W1 (resident)
            pl.BlockSpec((64, 1), lambda i: (0, 0)),          # b1
            pl.BlockSpec((32, 64), lambda i: (0, 0)),         # W2
            pl.BlockSpec((32, 1), lambda i: (0, 0)),          # b2
            pl.BlockSpec((2 * outp, 32), lambda i: (0, 0)),   # fused head W
            pl.BlockSpec((2 * outp, 1), lambda i: (0, 0)),    # fused head b
        ],
        out_specs=pl.BlockSpec((2 * outp, tb), lambda i: (0, i)),
        compiler_params=pltpu.CompilerParams(
            dimension_semantics=("parallel",)),
    )(xt, params["w1"], params["b1"], params["w2"], params["b2"], wh, bh)

    mean = fused[:outp, :B].T
    std = fused[outp:, :B].T
    return mean, std


def init_params(key, inp, outp):
    """Deterministic init mirroring the PyTorch module (weights ~ Normal(0, 0.1),
    biases ~ U(-1/sqrt(fan_in), 1/sqrt(fan_in))).  PyTorch-native [out, in] layout."""
    ks = jax.random.split(key, 8)

    def w(k, out_f, in_f):
        return (0.1 * jax.random.normal(k, (out_f, in_f))).astype(jnp.float32)

    def b(k, fan_in, out_f):
        bound = 1.0 / math.sqrt(float(fan_in))
        return jax.random.uniform(k, (out_f, 1), minval=-bound, maxval=bound,
                                  dtype=jnp.float32)

    return {
        "w1": w(ks[0], 64, inp),   "b1": b(ks[1], inp, 64),
        "w2": w(ks[2], 32, 64),    "b2": b(ks[3], 64, 32),
        "wm": w(ks[4], outp, 32),  "bm": b(ks[5], 32, outp),
        "ws": w(ks[6], outp, 32),  "bs": b(ks[7], 32, outp),
    }


def _reference_forward(x, p):
    """Pure-JAX reference (original, unsimplified std chain)."""
    h1 = jnp.maximum(x @ p["w1"].T + p["b1"].T, 0.0)
    h2 = jnp.maximum(h1 @ p["w2"].T + p["b2"].T, 0.0)
    mean = 30.0 * jnp.tanh(h2 @ p["wm"].T + p["bm"].T)
    std = jnp.exp(jnp.clip(jnp.logaddexp(h2 @ p["ws"].T + p["bs"].T, 0.0), -2.0, 10.0))
    return mean, std


if __name__ == "__main__":
    key = jax.random.PRNGKey(0)
    k_x, k_p = jax.random.split(key)

    B, inp, outp = 8, 4, 2          # small state dim / action dim
    x = jax.random.normal(k_x, (B, inp), dtype=jnp.float32)
    params = init_params(k_p, inp, outp)

    mean, std = actor_net_forward(x, params)
    jax.block_until_ready((mean, std))

    ref_mean, ref_std = _reference_forward(x, params)
    assert mean.shape == (B, outp) and std.shape == (B, outp)
    assert jnp.allclose(mean, ref_mean, atol=1e-4, rtol=1e-5)
    assert jnp.allclose(std, ref_std, atol=1e-4, rtol=1e-5)

    print("KERNEL_OK")
</pallas_src>

<mosaic_0001>
module attributes {stable_mosaic.version = 11 : i64} {
  func.func @_actor_kernel(%arg0: i32, %arg1: memref<4x128xf32, #tpu.memory_space<vmem>>, %arg2: memref<64x4xf32, #tpu.memory_space<vmem>>, %arg3: memref<64x1xf32, #tpu.memory_space<vmem>>, %arg4: memref<32x64xf32, #tpu.memory_space<vmem>>, %arg5: memref<32x1xf32, #tpu.memory_space<vmem>>, %arg6: memref<4x32xf32, #tpu.memory_space<vmem>>, %arg7: memref<4x1xf32, #tpu.memory_space<vmem>>, %arg8: memref<4x128xf32, #tpu.memory_space<vmem>>) attributes {dimension_semantics = [#tpu.dimension_semantics<parallel>], iteration_bounds = array<i64: 1>, scalar_prefetch = 0 : i64, scratch_operands = 0 : i64, tpu.core_type = #tpu.core_type<tc>, window_params = [{transform_indices = @transform_0, window_bounds = array<i64: 4, 128>}, {pipeline_mode = #tpu.pipeline_mode<synchronous>, transform_indices = @transform_1, window_bounds = array<i64: 64, 4>}, {pipeline_mode = #tpu.pipeline_mode<synchronous>, transform_indices = @transform_2, window_bounds = array<i64: 64, 1>}, {pipeline_mode = #tpu.pipeline_mode<synchronous>, transform_indices = @transform_3, window_bounds = array<i64: 32, 64>}, {pipeline_mode = #tpu.pipeline_mode<synchronous>, transform_indices = @transform_4, window_bounds = array<i64: 32, 1>}, {pipeline_mode = #tpu.pipeline_mode<synchronous>, transform_indices = @transform_5, window_bounds = array<i64: 4, 32>}, {pipeline_mode = #tpu.pipeline_mode<synchronous>, transform_indices = @transform_6, window_bounds = array<i64: 4, 1>}, {transform_indices = @transform_7, window_bounds = array<i64: 4, 128>}]} {
    %c0 = arith.constant 0 : index
    %c0_0 = arith.constant 0 : index
    %0 = vector.load %arg1[%c0, %c0_0] : memref<4x128xf32, #tpu.memory_space<vmem>>, vector<4x128xf32>
    %c0_1 = arith.constant 0 : index
    %c0_2 = arith.constant 0 : index
    %1 = vector.load %arg2[%c0_1, %c0_2] : memref<64x4xf32, #tpu.memory_space<vmem>>, vector<64x4xf32>
    %cst = arith.constant dense<0.000000e+00> : vector<64x128xf32>
    %2 = tpu.matmul %1, %0, %cst {dimension_numbers = #tpu.dot_dimension_numbers<[1], [0], [0], [1], [0, 0, 1, 1], [], []>} : vector<64x4xf32>, vector<4x128xf32>, vector<64x128xf32> -> vector<64x128xf32>
    %c0_3 = arith.constant 0 : index
    %c0_4 = arith.constant 0 : index
    %3 = vector.load %arg3[%c0_3, %c0_4] : memref<64x1xf32, #tpu.memory_space<vmem>>, vector<64x1xf32>
    %4 = vector.broadcast %3 : vector<64x1xf32> to vector<64x128xf32>
    %5 = arith.addf %2, %4 : vector<64x128xf32>
    %cst_5 = arith.constant 0.000000e+00 : f32
    %6 = vector.broadcast %cst_5 : f32 to vector<64x128xf32>
    %7 = arith.maximumf %5, %6 : vector<64x128xf32>
    %c0_6 = arith.constant 0 : index
    %c0_7 = arith.constant 0 : index
    %8 = vector.load %arg4[%c0_6, %c0_7] : memref<32x64xf32, #tpu.memory_space<vmem>>, vector<32x64xf32>
    %cst_8 = arith.constant dense<0.000000e+00> : vector<32x128xf32>
    %9 = tpu.matmul %8, %7, %cst_8 {dimension_numbers = #tpu.dot_dimension_numbers<[1], [0], [0], [1], [0, 0, 1, 1], [], []>} : vector<32x64xf32>, vector<64x128xf32>, vector<32x128xf32> -> vector<32x128xf32>
    %c0_9 = arith.constant 0 : index
    %c0_10 = arith.constant 0 : index
    %10 = vector.load %arg5[%c0_9, %c0_10] : memref<32x1xf32, #tpu.memory_space<vmem>>, vector<32x1xf32>
    %11 = vector.broadcast %10 : vector<32x1xf32> to vector<32x128xf32>
    %12 = arith.addf %9, %11 : vector<32x128xf32>
    %cst_11 = arith.constant 0.000000e+00 : f32
    %13 = vector.broadcast %cst_11 : f32 to vector<32x128xf32>
    %14 = arith.maximumf %12, %13 : vector<32x128xf32>
    %c0_12 = arith.constant 0 : index
    %c0_13 = arith.constant 0 : index
    %15 = vector.load %arg6[%c0_12, %c0_13] : memref<4x32xf32, #tpu.memory_space<vmem>>, vector<4x32xf32>
    %cst_14 = arith.constant dense<0.000000e+00> : vector<4x128xf32>
    %16 = tpu.matmul %15, %14, %cst_14 {dimension_numbers = #tpu.dot_dimension_numbers<[1], [0], [0], [1], [0, 0, 1, 1], [], []>} : vector<4x32xf32>, vector<32x128xf32>, vector<4x128xf32> -> vector<4x128xf32>
    %c0_15 = arith.constant 0 : index
    %c0_16 = arith.constant 0 : index
    %17 = vector.load %arg7[%c0_15, %c0_16] : memref<4x1xf32, #tpu.memory_space<vmem>>, vector<4x1xf32>
    %18 = vector.broadcast %17 : vector<4x1xf32> to vector<4x128xf32>
    %19 = arith.addf %16, %18 : vector<4x128xf32>
    %20 = math.tanh %19 : vector<4x128xf32>
    %cst_17 = arith.constant 3.000000e+01 : f32
    %21 = vector.broadcast %cst_17 : f32 to vector<4x128xf32>
    %22 = arith.mulf %21, %20 : vector<4x128xf32>
    %23 = math.exp %19 : vector<4x128xf32>
    %cst_18 = arith.constant 1.000000e+00 : f32
    %24 = vector.broadcast %cst_18 : f32 to vector<4x128xf32>
    %25 = arith.addf %24, %23 : vector<4x128xf32>
    %cst_19 = arith.constant 22026.4648 : f32
    %26 = vector.broadcast %cst_19 : f32 to vector<4x128xf32>
    %27 = arith.minimumf %25, %26 : vector<4x128xf32>
    %28 = tpu.iota {dimensions = array<i32: 0>} : vector<4x128xi32>
    %c2_i32 = arith.constant 2 : i32
    %29 = vector.broadcast %c2_i32 : i32 to vector<4x128xi32>
    %30 = arith.cmpi slt, %28, %29 : vector<4x128xi32>
    %31 = arith.select %30, %22, %27 : vector<4x128xi1>, vector<4x128xf32>
    %c0_20 = arith.constant 0 : index
    %c0_21 = arith.constant 0 : index
    %32 = vector.load %arg8[%c0_20, %c0_21] : memref<4x128xf32, #tpu.memory_space<vmem>>, vector<4x128xf32>
    tpu.vector_store %arg8[%c0_20, %c0_21], %31 {strides = array<i32>} : memref<4x128xf32, #tpu.memory_space<vmem>>, vector<4x128xf32>,
    return
  }
  func.func @transform_0(%arg0: i32) -> (i32, i32) {
    %c0_i32 = arith.constant 0 : i32
    %c0_i32_0 = arith.constant 0 : i32
    return %c0_i32, %arg0 : i32, i32
  }
  func.func @transform_1(%arg0: i32) -> (i32, i32) {
    %c0_i32 = arith.constant 0 : i32
    %c0_i32_0 = arith.constant 0 : i32
    %c0_i32_1 = arith.constant 0 : i32
    return %c0_i32, %c0_i32_0 : i32, i32
  }
  func.func @transform_2(%arg0: i32) -> (i32, i32) {
    %c0_i32 = arith.constant 0 : i32
    %c0_i32_0 = arith.constant 0 : i32
    %c0_i32_1 = arith.constant 0 : i32
    return %c0_i32, %c0_i32_0 : i32, i32
  }
  func.func @transform_3(%arg0: i32) -> (i32, i32) {
    %c0_i32 = arith.constant 0 : i32
    %c0_i32_0 = arith.constant 0 : i32
    %c0_i32_1 = arith.constant 0 : i32
    return %c0_i32, %c0_i32_0 : i32, i32
  }
  func.func @transform_4(%arg0: i32) -> (i32, i32) {
    %c0_i32 = arith.constant 0 : i32
    %c0_i32_0 = arith.constant 0 : i32
    %c0_i32_1 = arith.constant 0 : i32
    return %c0_i32, %c0_i32_0 : i32, i32
  }
  func.func @transform_5(%arg0: i32) -> (i32, i32) {
    %c0_i32 = arith.constant 0 : i32
    %c0_i32_0 = arith.constant 0 : i32
    %c0_i32_1 = arith.constant 0 : i32
    return %c0_i32, %c0_i32_0 : i32, i32
  }
  func.func @transform_6(%arg0: i32) -> (i32, i32) {
    %c0_i32 = arith.constant 0 : i32
    %c0_i32_0 = arith.constant 0 : i32
    %c0_i32_1 = arith.constant 0 : i32
    return %c0_i32, %c0_i32_0 : i32, i32
  }
  func.func @transform_7(%arg0: i32) -> (i32, i32) {
    %c0_i32 = arith.constant 0 : i32
    %c0_i32_0 = arith.constant 0 : i32
    return %c0_i32, %arg0 : i32, i32
  }
}

</mosaic_0001>

<bundles_post_ra>
// kernel: tpu_custom_call.1
= control target key start
LH: loop header
LB: loop body
LE: loop exit
PB: predicated region body
PF: predicated region fallthrough
CT: control target
= control target key end

     0   :  { %vm109_vm0 = vcmask 1043456   ;;  %vm84_vm1 = vcmask 31744   ;;  %v352_v2 = vmov 0   ;;  %s486_s0 = inlined_call_operand.vmem [shape: f32[4,128], index: 0, kind: input, shape index: {}]   ;;  %s487_s1 = inlined_call_operand.vmem [shape: f32[64,4], index: 1, kind: input, shape index: {}]   ;;  %s488_s2 = inlined_call_operand.vmem [shape: f32[64,1], index: 2, kind: input, shape index: {}]   ;;  %s489_s3 = inlined_call_operand.vmem [shape: f32[32,64], index: 3, kind: input, shape index: {}]   ;;  %s490_s4 = inlined_call_operand.vmem [shape: f32[32,1], index: 4, kind: input, shape index: {}]   ;;  %s491_s5 = inlined_call_operand.vmem [shape: f32[4,32], index: 5, kind: input, shape index: {}]   ;;  %s492_s6 = inlined_call_operand.vmem [shape: f32[4,1], index: 6, kind: input, shape index: {}]   ;;  %s493_s7 = inlined_call_operand.hbm [shape: f32[4,128], index: 7, kind: output, shape index: {}]  }
   0x1   :  { %v27_v0 = vld [vmem:[%s486_s0] sm:$0xf]  ;;  %319 = vset.pattern.permute.xlu0 %v352_v2  ;;  %v43_v3 = vld [vmem:[%s488_s2 + $0x38] sm:$0xff]  ;;  %v41_v5 = vld [vmem:[%s488_s2 + $0x28] sm:$0xff]  ;;  %320 = vset.pattern.permute.xlu1 %v352_v2 }
   0x2   :  { %v32_v1 = vld [vmem:[%s487_s1 + $0x20] sm:$0xff]  ;;  %308 = vmatpush.msk.msra.mxu3 %vm109_vm0, %v27_v0  ;;  %81 = vperm.xlu0 %319, %v43_v3   ;;  %v39_v6 = vld [vmem:[%s488_s2 + $0x18] sm:$0xff]  ;;  %v33_v7 = vld [vmem:[%s487_s1 + $0x28] sm:$0xff] }
   0x3   :  { %v28_v4 = vld [vmem:[%s487_s1] sm:$0xff]  ;;  %299 = vmatmul.msk.f32.vlgmr.msra.gmra.mxu3 %vm84_vm1, %v32_v1  ;;  %294 = vmatpush.msk.msra.mxu0 %vm109_vm0, %v27_v0  ;;  %v42_v8 = vld [vmem:[%s488_s2 + $0x30] sm:$0xff] }
   0x4   :  { %295 = vmatmul.msk.f32.vlgmr.msra.gmra.mxu0 %vm84_vm1, %v28_v4  ;;  %71 = vperm.xlu1 %320, %v41_v5  }
   0x5   :  { %321 = vset.pattern.permute.xlu2 %v352_v2 }
   0x6   :  { %61 = vperm.xlu2 %321, %v39_v6  }
   0x7   :  { %12 = vsyncpa [#allocation3], 0  ;;  %v29_v9 = vld [vmem:[%s487_s1 + $0x8] sm:$0xff]  ;;  %v40_v10 = vld [vmem:[%s488_s2 + $0x20] sm:$0xff]  ;;  %vm190_vm2 = vcmask 523264   ;;  %vm243_vm3 = vcmask 261120  }
   0x8   :  { %v38_v11 = vld [vmem:[%s488_s2 + $0x10] sm:$0xff]  ;;  %v37_v13 = vld [vmem:[%s488_s2 + $0x8] sm:$0xff]  ;;  %v36_v15 = vld [vmem:[%s488_s2] sm:$0xff]  ;;  %s353_s25 = smov [#allocation2]  }
   0x9   :  { %v34_v12 = vld [vmem:[%s487_s1 + $0x30] sm:$0xff]  ;;  %v169_v16 = vld [vmem:[%s490_s4 + $0x18] sm:$0xff]  ;;  %v167_v20 = vld [vmem:[%s490_s4 + $0x8] sm:$0xff]  ;;  %s283_s26 = sshll.u32 %s353_s25, 4  ;;  %s284_s26 = int_to_ptr.vmem [resolvable:$true] %s283_s26 }
   0xa   :  { %76 = vperm.xlu0 %319, %v42_v8   ;;  %v30_v14 = vld [vmem:[%s487_s1 + $0x10] sm:$0xff]  ;;  %v35_v17 = vld [vmem:[%s487_s1 + $0x38] sm:$0xff]  ;;  %v166_v21 = vld [vmem:[%s490_s4] sm:$0xff] }
   0xb   :  { %300 = vmatmul.msk.f32.gmra.mxu3 %vm84_vm1, %v33_v7  ;;  %v168_v18 = vld [vmem:[%s490_s4 + $0x10] sm:$0xff]  ;;  %v31_v19 = vld [vmem:[%s487_s1 + $0x18] sm:$0xff]  ;;  %v237_v22 = vld [vmem:[%s492_s6] sm:$0xf] }
   0xc   :  { %296 = vmatmul.msk.f32.gmra.mxu0 %vm84_vm1, %v29_v9  ;;  %66 = vperm.xlu1 %320, %v40_v10   ;;  %v162_v55 = vld [vmem:[%s489_s3] sm:$0xff]  ;;  %v165_v56 = vld [vmem:[%s489_s3 + $0x18] sm:$0xff]  ;;  %v163_v57 = vld [vmem:[%s489_s3 + $0x8] sm:$0xff] }
   0xd   :  { %v164_v58 = vld [vmem:[%s489_s3 + $0x10] sm:$0xff] }
   0xe   :  { %56 = vperm.xlu2 %321, %v38_v11   ;;  %v236_v11 = vld [vmem:[%s491_s5] sm:$0xf]  ;;  %s285_s5 = sshll.u32 %s493_s7, 4  ;;  %s286_s5 = int_to_ptr.hbm [resolvable:$true] %s285_s5 }
  0x12   :  { %51 = vperm.xlu0 %319, %v37_v13  }
  0x13   :  { %301 = vmatmul.msk.f32.gmra.mxu3 %vm84_vm1, %v34_v12 }
  0x14   :  { %297 = vmatmul.msk.f32.gmra.mxu0 %vm84_vm1, %v30_v14  ;;  %46 = vperm.xlu1 %320, %v36_v15  }
  0x16   :  { %187 = vperm.xlu2 %321, %v169_v16   ;;  %v273_v16 = vlaneseq }
  0x1a   :  { %182 = vperm.xlu0 %319, %v168_v18  }
  0x1b   :  { %302 = vmatmul.msk.f32.gmra.mxu3 %vm84_vm1, %v35_v17  ;;  %v274_v17 = vshrl.u32 %v273_v16, 7 }
  0x1c   :  { %298 = vmatmul.msk.f32.gmra.mxu0 %vm84_vm1, %v31_v19  ;;  %177 = vperm.xlu1 %320, %v167_v20  }
  0x1d   :  { %vm275_vm4 = vcmp.lt.s32.totalorder %v274_v17, 2 }
  0x1e   :  { %172 = vperm.xlu2 %321, %v166_v21  }
  0x22   :  { %240 = vperm.xlu0 %319, %v237_v22  }
  0x60   :  { %v62_v31 = vpop.permute.xlu2 %61 }
  0x68   :  { %v57_v44 = vpop.permute.xlu2 %56 }
  0x70   :  { %v188_v60 = vpop.permute.xlu2 %187 }
  0x74   :  { %v82_v27 = vpop.permute.xlu0 %81 }
  0x76   :  { %v72_v28 = vpop.permute.xlu1 %71 }
  0x78   :  { %v173_v6 = vpop.permute.xlu2 %172 }
  0x7c   :  { %v77_v32 = vpop.permute.xlu0 %76 }
  0x7e   :  { %v67_v33 = vpop.permute.xlu1 %66 }
  0x81   :  { %v130_v23 = vpop.f32.mrf.mxu0 }
  0x84   :  { %v52_v47 = vpop.permute.xlu0 %51 }
  0x86   :  { %v142_v24 = vpop.f32.mrf.mxu3  ;;  %v47_v48 = vpop.permute.xlu1 %46 }
  0x87   :  { %v143_v40 = vadd.f32 %v142_v24, %v67_v33  ;;  %v131_v51 = vadd.f32 %v130_v23, %v47_v48 }
  0x89   :  { %v133_v26 = vpop.f32.mrf.mxu0  ;;  %v158_v45 = vmax.f32 %v143_v40, 0.0  ;;  %v154_v54 = vmax.f32 %v131_v51, 0.0 }
  0x8a   :  { %v134_v49 = vadd.f32 %v133_v26, %v52_v47 }
  0x8c   :  { %v155_v53 = vmax.f32 %v134_v49, 0.0  ;;  %v183_v1 = vpop.permute.xlu0 %182 }
  0x8e   :  { %v145_v25 = vpop.f32.mrf.mxu3  ;;  %v178_v2 = vpop.permute.xlu1 %177 }
  0x8f   :  { %v146_v37 = vadd.f32 %v145_v25, %v72_v28 }
  0x91   :  { %v136_v30 = vpop.f32.mrf.mxu0  ;;  %v159_v42 = vmax.f32 %v146_v37, 0.0 }
  0x92   :  { %v137_v46 = vadd.f32 %v136_v30, %v57_v44 }
  0x94   :  { %v156_v52 = vmax.f32 %v137_v46, 0.0  ;;  %v241_v12 = vpop.permute.xlu0 %240 }
  0x96   :  { %v148_v29 = vpop.f32.mrf.mxu3 }
  0x97   :  { %v149_v35 = vadd.f32 %v148_v29, %v77_v32 }
  0x99   :  { %v139_v39 = vpop.f32.mrf.mxu0  ;;  %v160_v41 = vmax.f32 %v149_v35, 0.0 }
  0x9a   :  { %v140_v43 = vadd.f32 %v139_v39, %v62_v31 }
  0x9c   :  { %v157_v50 = vmax.f32 %v140_v43, 0.0 }
  0x9e   :  { %v151_v34 = vpop.f32.mrf.mxu3 }
  0x9f   :  { %v152_v36 = vadd.f32 %v151_v34, %v82_v27 }
  0xa1   :  { %v161_v38 = vmax.f32 %v152_v36, 0.0 }
  0xa3   :  { %211 = vmatpush.msra.mxu1 %v161_v38  ;;  %309 = vmatpush.msra.mxu2 %v161_v38 }
  0xa5   :  { %212 = vmatpush.msra.mxu1 %v160_v41  ;;  %310 = vmatpush.msra.mxu2 %v160_v41 }
  0xa7   :  { %213 = vmatpush.msra.mxu1 %v159_v42  ;;  %311 = vmatpush.msra.mxu2 %v159_v42 }
  0xa9   :  { %214 = vmatpush.msra.mxu1 %v158_v45  ;;  %312 = vmatpush.msra.mxu2 %v158_v45 }
  0xab   :  { %215 = vmatpush.msra.mxu1 %v157_v50  ;;  %313 = vmatpush.msra.mxu2 %v157_v50 }
  0xad   :  { %216 = vmatpush.msra.mxu1 %v156_v52  ;;  %314 = vmatpush.msra.mxu2 %v156_v52 }
  0xaf   :  { %217 = vmatpush.msra.mxu1 %v155_v53  ;;  %315 = vmatpush.msra.mxu2 %v155_v53 }
  0xb1   :  { %218 = vmatpush.msra.mxu1 %v154_v54  ;;  %316 = vmatpush.msra.mxu2 %v154_v54 }
  0xb2   :  { %303 = vmatmul.msk.f32.vlgmr.msra.gmra.mxu1 %vm190_vm2, %v162_v55  ;;  %306 = vmatmul.msk.f32.vlgmr.msra.gmra.mxu2 %vm190_vm2, %v165_v56 }
  0xba   :  { %304 = vmatmul.msk.f32.gmra.mxu1 %vm190_vm2, %v163_v57 }
  0xc2   :  { %305 = vmatmul.msk.f32.gmra.mxu1 %vm190_vm2, %v164_v58 }
 0x12f   :  { %v220_v59 = vpop.f32.mrf.mxu1 }
 0x130   :  { %v221_v7 = vadd.f32 %v220_v59, %v173_v6 }
 0x132   :  { %v232_v10 = vmax.f32 %v221_v7, 0.0 }
 0x135   :  { %v229_v61 = vpop.f32.mrf.mxu2 }
 0x136   :  { %v230_v62 = vadd.f32 %v229_v61, %v188_v60 }
 0x137   :  { %v223_v63 = vpop.f32.mrf.mxu1 }
 0x138   :  { %v235_v0 = vmax.f32 %v230_v62, 0.0  ;;  %v224_v4 = vadd.f32 %v223_v63, %v178_v2 }
 0x13a   :  { %259 = vmatpush.msrb.mxu2 %v235_v0  ;;  %v233_v9 = vmax.f32 %v224_v4, 0.0 }
 0x13f   :  { %v226_v3 = vpop.f32.mrf.mxu1 }
 0x140   :  { %v227_v5 = vadd.f32 %v226_v3, %v183_v1 }
 0x142   :  { %v234_v8 = vmax.f32 %v227_v5, 0.0 }
 0x144   :  { %260 = vmatpush.msrb.mxu2 %v234_v8 }
 0x146   :  { %261 = vmatpush.msrb.mxu2 %v233_v9 }
 0x148   :  { %262 = vmatpush.msrb.mxu2 %v232_v10 }
 0x149   :  { %307 = vmatmul.msk.f32.vlgmr.msrb.gmra.mxu2 %vm243_vm3, %v236_v11 }
 0x1cc   :  { %v264_v13 = vpop.f32.mrf.mxu2 }
 0x1cd   :  { %v265_v14 = vadd.f32 %v264_v13, %v241_v12 }
 0x1cf   :  { %v269_v15 = vmul.f32 1.442695, %v265_v14  ;;  %322 = vtanh.f32 %v265_v14 }
 0x1d1   :  { %324 = vpow2.f32 %v269_v15 }
 0x1d5   :  { %v323_v18 = vpop.eup %322 }
 0x1d6   :  { %v268_v21 = vmul.f32 30.0, %v323_v18 }
 0x1d7   :  { %v325_v19 = vpop.eup %324 }
 0x1d8   :  { %v271_v20 = vadd.f32 1.0, %v325_v19 }
 0x1da   :  { %v272_v22 = vmin.f32 %v271_v20, 22026.465 }
 0x1dc   :  { %v276_v23 = vsel %vm275_vm4, %v268_v21, %v272_v22 }
 0x1dd   :  { %277 = vst [vmem:[#allocation2] sm:$0xf] %v276_v23 }
 0x1de   :  { %288 = dma.vmem_to_hbm [thread:$0]  %s284_s26, 64, %s286_s5, [#allocation3]  }
 0x1df   :  { %350 = dma.done.wait [#allocation3], 64  }
 0x1e0   :  { %351 = vsyncadd [#allocation3], 4294967232 }
 0x1e1   :  { %293 = vsyncpa [#allocation3], 1 }

</bundles_post_ra>
